<compile_context>
chip_gen: v6e
topology: v6e:2x2x1
jax: 0.10.0
libtpu: 0.0.40
codegen_flags: <defaults>
</compile_context>

<pallas_src>
import functools

import jax
import jax.numpy as jnp
import numpy as np
from jax import lax
from jax.experimental import pallas as pl
from jax.experimental.pallas import tpu as pltpu


# ------------------------- chip / tile selection -------------------------

def _device_kind():
    try:
        return jax.devices()[0].device_kind.lower()
    except Exception:
        return ""


def _pick_tile(hw, c, itemsize, max_bytes):
    """Largest pixel tile T (multiple of 128, or the full HW extent) such that
    a (1, C, T) block is at most max_bytes."""
    max_t = max(128, max_bytes // (c * itemsize))
    if hw <= max_t:
        return hw                      # full extent satisfies the layout rule
    return (max_t // 128) * 128        # lane-aligned tile


def _lower_median(v):
    # torch.median semantics: the lower of the two middle values (even length).
    return jnp.sort(v)[(v.shape[0] - 1) // 2]


def _class_weights_from_counts(counts, c, ignore_index, weight_scheme):
    if weight_scheme == 'icr':
        w = 1.0 / jnp.sqrt(counts)
    else:  # 'mcf'
        w = _lower_median(counts) / counts
    if 0 <= ignore_index < c:
        w = w.at[ignore_index].set(0.0)
    return w / jnp.sum(w)


# ------------------------- shared in-kernel math -------------------------

def _logsumexp_and_target(x, mask, exp_dtype):
    """x: (1, C, T) logits; mask: (1, C, T) bool one-hot of the target class.
    Returns (lse, xt), both (1, 1, T) float32.  exp_dtype=bfloat16 halves EUP
    work on chips with a bf16 EUP; all reductions/accumulations stay in f32."""
    xf = x.astype(jnp.float32)
    m = jnp.max(xf, axis=1, keepdims=True)                        # (1, 1, T)
    if exp_dtype == jnp.bfloat16:
        e = jnp.exp(x.astype(jnp.bfloat16) - m.astype(jnp.bfloat16))
        s = jnp.sum(e.astype(jnp.float32), axis=1, keepdims=True)
    else:
        s = jnp.sum(jnp.exp(xf - m), axis=1, keepdims=True)
    lse = m + jnp.log(s)                                          # (1, 1, T)
    xt = jnp.sum(jnp.where(mask, xf, 0.0), axis=1, keepdims=True)  # logit@target
    return lse, xt


# ------------------------- kernels -------------------------

def _fused_wce_kernel(x_ref, t_ref, counts_ref, nll_ref, *,
                      hw, tile, n_inner, needs_mask, exp_dtype):
    """Single fused pass: per-(batch, chunk) per-class pixel counts and
    per-class sums of the (unweighted) NLL.  The class-weight normalization
    and num/den contraction are tiny C-length JAX glue afterwards."""
    i = pl.program_id(2)

    @pl.when(i == 0)
    def _():
        counts_ref[...] = jnp.zeros_like(counts_ref)
        nll_ref[...] = jnp.zeros_like(nll_ref)

    x = x_ref[...]                                               # (1, C, T)
    t = t_ref[...]                                               # (1, 1, T) int32
    _, c, tsz = x.shape

    if needs_mask:  # only emitted when HW is not a multiple of the tile
        p = pl.program_id(1)
        lane = lax.broadcasted_iota(jnp.int32, (1, 1, tsz), 2)
        start = (p * n_inner + i) * tile
        t = jnp.where(start + lane < hw, t, jnp.int32(-1))       # OOB -> no class

    cls = lax.broadcasted_iota(jnp.int32, (1, c, tsz), 1)
    mask = (t == cls)                                            # (1, C, T) bool

    lse, xt = _logsumexp_and_target(x, mask, exp_dtype)
    nll = lse - xt                                               # (1, 1, T) f32

    # Out-of-bounds / ignored lanes match no class row -> selected away here.
    counts_ref[...] += jnp.sum(mask.astype(jnp.float32), axis=2, keepdims=True)
    nll_ref[...] += jnp.sum(jnp.where(mask, nll, 0.0), axis=2, keepdims=True)


def _wce_kernel(x_ref, t_ref, w_ref, num_ref, den_ref, *,
                ignore_index, hw, tile, n_inner, needs_mask, exp_dtype):
    """User-provided class weights: accumulate sum(w_i * nll_i) and sum(w_i)
    over valid pixels, per (batch, chunk)."""
    i = pl.program_id(2)

    @pl.when(i == 0)
    def _():
        num_ref[...] = jnp.zeros_like(num_ref)
        den_ref[...] = jnp.zeros_like(den_ref)

    x = x_ref[...]                                               # (1, C, T)
    t = t_ref[...]                                               # (1, 1, T)
    w = w_ref[...]                                               # (1, C, 1) f32
    _, c, tsz = x.shape

    if needs_mask:
        p = pl.program_id(1)
        lane = lax.broadcasted_iota(jnp.int32, (1, 1, tsz), 2)
        start = (p * n_inner + i) * tile
        t = jnp.where(start + lane < hw, t, jnp.int32(ignore_index))  # OOB -> ignored

    cls = lax.broadcasted_iota(jnp.int32, (1, c, tsz), 1)
    mask = (t == cls)                                            # (1, C, T)

    lse, xt = _logsumexp_and_target(x, mask, exp_dtype)
    wt = jnp.sum(jnp.where(mask, w, 0.0), axis=1, keepdims=True)  # (1, 1, T)

    valid = (t != ignore_index)                                  # (1, 1, T)
    num_ref[...] += jnp.sum(jnp.where(valid, wt * (lse - xt), 0.0),
                            axis=2, keepdims=True)
    den_ref[...] += jnp.sum(jnp.where(valid, wt, 0.0), axis=2, keepdims=True)


def _wce_none_kernel(x_ref, t_ref, w_ref, o_ref, *, ignore_index, exp_dtype):
    """Per-pixel weighted NLL (reduction='none'); ignored pixels -> 0.
    Ragged-tail lanes are handled by Pallas dropping OOB output stores."""
    x = x_ref[...]
    t = t_ref[...]
    w = w_ref[...]
    _, c, tsz = x.shape

    cls = lax.broadcasted_iota(jnp.int32, (1, c, tsz), 1)
    mask = (t == cls)

    lse, xt = _logsumexp_and_target(x, mask, exp_dtype)
    wt = jnp.sum(jnp.where(mask, w, 0.0), axis=1, keepdims=True)

    o_ref[...] = jnp.where(t != ignore_index, wt * (lse - xt), 0.0)


def _counts_kernel(t_ref, counts_ref, *, hw, tile, needs_mask):
    """Per-class pixel counts.  Only used for reduction='none' with computed
    weights; otherwise fused into _fused_wce_kernel."""
    i = pl.program_id(1)

    @pl.when(i == 0)
    def _():
        counts_ref[...] = jnp.zeros_like(counts_ref)

    t = t_ref[...]                                               # (1, 1, T)
    c = counts_ref.shape[1]
    tsz = t.shape[2]

    if needs_mask:
        lane = lax.broadcasted_iota(jnp.int32, (1, 1, tsz), 2)
        t = jnp.where(i * tile + lane < hw, t, jnp.int32(-1))    # OOB -> no class

    cls = lax.broadcasted_iota(jnp.int32, (1, c, tsz), 1)
    mask = (t == cls)
    counts_ref[...] += jnp.sum(mask.astype(jnp.float32), axis=2, keepdims=True)


# ------------------------- wrapper -------------------------

def balanced_cross_entropy_loss(predict, target, *, weight=None,
                                ignore_index=-100, reduction='mean',
                                weight_scheme='icr',
                                wce_block_bytes=None,
                                counts_block_bytes=None):
    assert weight_scheme in ('icr', 'mcf'), "'weight_scheme' is not recognized."
    if reduction not in ('mean', 'sum', 'none'):
        raise ValueError(f"unknown reduction: {reduction}")

    n, c = predict.shape[0], predict.shape[1]
    hw = int(np.prod(predict.shape[2:]))

    # Zero-copy views: NCHW -> (N, C, HW) ; targets -> (N, 1, HW) int32.
    x = predict.reshape(n, c, hw)                  # native dtype, cast in-kernel
    t = target.reshape(n, 1, hw).astype(jnp.int32)

    # ---- per-generation tuning ----
    kind = _device_kind()
    is_v7 = 'v7' in kind
    has_bf16_eup = ('v6' in kind) or is_v7
    if wce_block_bytes is None:
        wce_block_bytes = (2 << 20) if is_v7 else (4 << 20)     # tighter on 64 MiB VMEM
    if counts_block_bytes is None:
        counts_block_bytes = (2 << 20) if is_v7 else (4 << 20)
    vmem_limit = (48 << 20) if is_v7 else (64 << 20)

    # bf16 exp only where the chip has a bf16 EUP and the input is bf16;
    # on v5e (no bf16 VPU/EUP) f32 is the fast path.
    exp_dtype = (jnp.bfloat16
                 if (predict.dtype == jnp.bfloat16 and has_bf16_eup)
                 else jnp.float32)

    itemsize = jnp.dtype(x.dtype).itemsize
    tile = _pick_tile(hw, c, itemsize, wce_block_bytes)
    n_tiles = pl.cdiv(hw, tile)
    needs_mask = (hw % tile) != 0

    # Extra 'parallel' HW-split so v7x's two TensorCores stay busy at small N.
    p_chunks = 2 if (is_v7 and n < 4 and n_tiles >= 2 and n_tiles % 2 == 0) else 1
    n_inner = n_tiles // p_chunks

    x_spec = pl.BlockSpec((1, c, tile), lambda b, p, i: (b, 0, p * n_inner + i))
    t_spec = pl.BlockSpec((1, 1, tile), lambda b, p, i: (b, 0, p * n_inner + i))
    w_spec = pl.BlockSpec((1, c, 1), lambda b, p, i: (0, 0, 0))
    acc_params = pltpu.CompilerParams(
        dimension_semantics=("parallel", "parallel", "arbitrary"),
        vmem_limit_bytes=vmem_limit)

    # ---------- fused path: computed weights + mean/sum (single HBM pass) ----------
    if reduction != 'none' and weight is None:
        counts_out, nll_out = pl.pallas_call(
            functools.partial(_fused_wce_kernel, hw=hw, tile=tile,
                              n_inner=n_inner, needs_mask=needs_mask,
                              exp_dtype=exp_dtype),
            out_shape=(jax.ShapeDtypeStruct((n * p_chunks, c, 1), jnp.float32),
                       jax.ShapeDtypeStruct((n * p_chunks, c, 1), jnp.float32)),
            grid=(n, p_chunks, n_inner),
            in_specs=[x_spec, t_spec],
            out_specs=(pl.BlockSpec((1, c, 1),
                                    lambda b, p, i: (b * p_chunks + p, 0, 0)),
                       pl.BlockSpec((1, c, 1),
                                    lambda b, p, i: (b * p_chunks + p, 0, 0))),
            compiler_params=acc_params,
        )(x, t)
        counts = jnp.sum(counts_out, axis=0)[:, 0]               # (C,)
        nll_c = jnp.sum(nll_out, axis=0)[:, 0]                   # (C,)
        class_weights = _class_weights_from_counts(counts, c, ignore_index,
                                                   weight_scheme)
        num = jnp.sum(class_weights * nll_c)
        if reduction == 'sum':
            return num
        return num / jnp.sum(class_weights * counts)             # 'mean'

    # ---------- class weights for the remaining paths ----------
    if weight is None:
        # reduction == 'none': a dedicated (targets-only, 4 B/pixel) counts pass.
        tile_cnt = _pick_tile(hw, c, 4, counts_block_bytes)
        counts_out = pl.pallas_call(
            functools.partial(_counts_kernel, hw=hw, tile=tile_cnt,
                              needs_mask=(hw % tile_cnt) != 0),
            out_shape=jax.ShapeDtypeStruct((n, c, 1), jnp.float32),
            grid=(n, pl.cdiv(hw, tile_cnt)),
            in_specs=[pl.BlockSpec((1, 1, tile_cnt), lambda b, i: (b, 0, i))],
            out_specs=pl.BlockSpec((1, c, 1), lambda b, i: (b, 0, 0)),
            compiler_params=pltpu.CompilerParams(
                dimension_semantics=("parallel", "arbitrary"),
                vmem_limit_bytes=vmem_limit),
        )(t)
        counts = jnp.sum(counts_out, axis=0)[:, 0]
        class_weights = _class_weights_from_counts(counts, c, ignore_index,
                                                   weight_scheme)
    else:
        class_weights = jnp.asarray(weight, jnp.float32)
        if ignore_index >= 0:
            # The PyTorch module inserts a zero weight at ignore_index, so the
            # provided weight must have length C-1 in that case.
            class_weights = jnp.concatenate(
                [class_weights[:ignore_index],
                 jnp.zeros((1,), jnp.float32),
                 class_weights[ignore_index:]], axis=0)
        assert class_weights.shape[0] == c, (
            "weight must have length C (or C-1 when ignore_index >= 0)")

    w3 = class_weights.reshape(1, c, 1).astype(jnp.float32)

    # ---------- reduction == 'none': per-pixel, lane-dense output ----------
    if reduction == 'none':
        out = pl.pallas_call(
            functools.partial(_wce_none_kernel, ignore_index=ignore_index,
                              exp_dtype=exp_dtype),
            out_shape=jax.ShapeDtypeStruct((n, 1, hw), jnp.float32),
            grid=(n, n_tiles),
            in_specs=[pl.BlockSpec((1, c, tile), lambda b, i: (b, 0, i)),
                      pl.BlockSpec((1, 1, tile), lambda b, i: (b, 0, i)),
                      pl.BlockSpec((1, c, 1), lambda b, i: (0, 0, 0))],
            out_specs=pl.BlockSpec((1, 1, tile), lambda b, i: (b, 0, i)),
            compiler_params=pltpu.CompilerParams(
                dimension_semantics=("parallel", "parallel"),
                vmem_limit_bytes=vmem_limit),
        )(x, t, w3)
        return out.reshape(target.shape)

    # ---------- user-provided weights + mean/sum ----------
    num, den = pl.pallas_call(
        functools.partial(_wce_kernel, ignore_index=ignore_index, hw=hw,
                          tile=tile, n_inner=n_inner, needs_mask=needs_mask,
                          exp_dtype=exp_dtype),
        out_shape=(jax.ShapeDtypeStruct((n * p_chunks, 1, 1), jnp.float32),
                   jax.ShapeDtypeStruct((n * p_chunks, 1, 1), jnp.float32)),
        grid=(n, p_chunks, n_inner),
        in_specs=[x_spec, t_spec, w_spec],
        out_specs=(pl.BlockSpec((1, 1, 1),
                                lambda b, p, i: (b * p_chunks + p, 0, 0)),
                   pl.BlockSpec((1, 1, 1),
                                lambda b, p, i: (b * p_chunks + p, 0, 0))),
        compiler_params=acc_params,
    )(x, t, w3)

    if reduction == 'mean':
        return jnp.sum(num) / jnp.sum(den)
    return jnp.sum(num)  # 'sum'


# ------------------------- pure-JAX reference -------------------------

def _reference(predict, target, *, class_weights=None, ignore_index=-100,
               reduction='mean', weight_scheme='icr'):
    n, c = predict.shape[0], predict.shape[1]
    x = jnp.moveaxis(predict, 1, -1).reshape(-1, c).astype(jnp.float32)
    t = target.reshape(-1).astype(jnp.int32)
    if class_weights is None:
        counts = jnp.sum((t[:, None] == jnp.arange(c)[None, :]).astype(jnp.float32),
                         axis=0)
        if weight_scheme == 'icr':
            w = 1.0 / jnp.sqrt(counts)
        else:
            w = jnp.sort(counts)[(c - 1) // 2] / counts
        if 0 <= ignore_index < c:
            w = w.at[ignore_index].set(0.0)
        w = w / jnp.sum(w)
    else:
        w = jnp.asarray(class_weights, jnp.float32)
    logp = jax.nn.log_softmax(x, axis=-1)
    valid = (t != ignore_index)
    t_safe = jnp.where(valid, jnp.clip(t, 0, c - 1), 0)
    nll = -jnp.take_along_axis(logp, t_safe[:, None], axis=-1)[:, 0]
    wt = w[t_safe] * valid.astype(jnp.float32)
    per_pixel = wt * nll
    if reduction == 'mean':
        return jnp.sum(per_pixel) / jnp.sum(wt)
    if reduction == 'sum':
        return jnp.sum(per_pixel)
    return per_pixel.reshape(target.shape)


# ------------------------- main -------------------------

if __name__ == "__main__":
    key = jax.random.PRNGKey(0)
    k1, k2, k3, k4 = jax.random.split(key, 4)

    N, C, H, W = 2, 4, 16, 16
    predict = jax.random.normal(k1, (N, C, H, W), dtype=jnp.float32)
    target = jax.random.randint(k2, (N, H, W), 0, C, dtype=jnp.int32)

    # 1) fused single-pass path: computed 'icr' weights, reduction='mean'
    out = jax.block_until_ready(balanced_cross_entropy_loss(
        predict, target, reduction='mean', weight_scheme='icr'))
    ref = _reference(predict, target, reduction='mean', weight_scheme='icr')
    np.testing.assert_allclose(np.asarray(out), np.asarray(ref),
                               rtol=1e-5, atol=1e-6)

    # 1b) reduction='sum' reuses the same fused pass
    out = jax.block_until_ready(balanced_cross_entropy_loss(
        predict, target, reduction='sum', weight_scheme='icr'))
    ref = _reference(predict, target, reduction='sum', weight_scheme='icr')
    np.testing.assert_allclose(np.asarray(out), np.asarray(ref),
                               rtol=1e-5, atol=1e-5)

    # 2) reduction='none', 'mcf' weights, in-range ignore_index
    out = jax.block_until_ready(balanced_cross_entropy_loss(
        predict, target, reduction='none', weight_scheme='mcf', ignore_index=2))
    ref = _reference(predict, target, reduction='none', weight_scheme='mcf',
                     ignore_index=2)
    np.testing.assert_allclose(np.asarray(out), np.asarray(ref),
                               rtol=1e-5, atol=1e-6)

    # 3) ragged tail + multi-tile accumulation (forced tiny blocks)
    H2, W2 = 17, 17
    predict2 = jax.random.normal(k3, (N, C, H2, W2), dtype=jnp.float32)
    target2 = jax.random.randint(k4, (N, H2, W2), 0, C, dtype=jnp.int32)
    out = jax.block_until_ready(balanced_cross_entropy_loss(
        predict2, target2, reduction='mean', weight_scheme='icr',
        ignore_index=1, wce_block_bytes=2048))
    ref = _reference(predict2, target2, reduction='mean', weight_scheme='icr',
                     ignore_index=1)
    np.testing.assert_allclose(np.asarray(out), np.asarray(ref),
                               rtol=1e-5, atol=1e-6)

    # 4) user-provided weight (length C-1) with a zero inserted at ignore_index
    user_w = [0.2, 0.5, 0.3]
    out = jax.block_until_ready(balanced_cross_entropy_loss(
        predict, target, weight=user_w, ignore_index=1, reduction='mean'))
    full_w = jnp.array([0.2, 0.0, 0.5, 0.3], jnp.float32)
    ref = _reference(predict, target, class_weights=full_w, ignore_index=1,
                     reduction='mean')
    np.testing.assert_allclose(np.asarray(out), np.asarray(ref),
                               rtol=1e-5, atol=1e-6)

    # 5) bf16 logits: bf16 EUP exp path on v6e/v7x, f32 path on v5e (loose tol)
    predict_bf = predict.astype(jnp.bfloat16)
    out = jax.block_until_ready(balanced_cross_entropy_loss(
        predict_bf, target, reduction='mean', weight_scheme='icr'))
    ref = _reference(predict_bf, target, reduction='mean', weight_scheme='icr')
    np.testing.assert_allclose(np.asarray(out), np.asarray(ref),
                               rtol=3e-2, atol=3e-2)

    print("KERNEL_OK")
</pallas_src>

<mosaic_0001>
module attributes {stable_mosaic.version = 11 : i64} {
  func.func @_fused_wce_kernel(%arg0: i32, %arg1: i32, %arg2: i32, %arg3: memref<1x4x256xf32, #tpu.memory_space<vmem>>, %arg4: memref<1x1x256xi32, #tpu.memory_space<vmem>>, %arg5: memref<1x4x1xf32, #tpu.memory_space<vmem>>, %arg6: memref<1x4x1xf32, #tpu.memory_space<vmem>>) attributes {dimension_semantics = [#tpu.dimension_semantics<parallel>, #tpu.dimension_semantics<parallel>, #tpu.dimension_semantics<arbitrary>], iteration_bounds = array<i64: 2, 1, 1>, scalar_prefetch = 0 : i64, scratch_operands = 0 : i64, tpu.core_type = #tpu.core_type<tc>, window_params = [{transform_indices = @transform_0, window_bounds = array<i64: 1, 4, 256>}, {transform_indices = @transform_1, window_bounds = array<i64: 1, 1, 256>}, {transform_indices = @transform_2, window_bounds = array<i64: 1, 4, 1>}, {transform_indices = @transform_3, window_bounds = array<i64: 1, 4, 1>}]} {
    %c0_i32 = arith.constant 0 : i32
    %0 = arith.cmpi eq, %arg2, %c0_i32 : i32
    %1 = arith.extui %0 : i1 to i32
    %c0_i32_0 = arith.constant 0 : i32
    %2 = arith.cmpi ne, %1, %c0_i32_0 : i32
    scf.if %2 {
      %cst_24 = arith.constant 0.000000e+00 : f32
      %38 = vector.broadcast %cst_24 : f32 to vector<1x4x1xf32>
      %c0_25 = arith.constant 0 : index
      %c0_26 = arith.constant 0 : index
      %c0_27 = arith.constant 0 : index
      %39 = vector.load %arg5[%c0_25, %c0_26, %c0_27] : memref<1x4x1xf32, #tpu.memory_space<vmem>>, vector<1x4x1xf32>
      tpu.vector_store %arg5[%c0_25, %c0_26, %c0_27], %38 {strides = array<i32>} : memref<1x4x1xf32, #tpu.memory_space<vmem>>, vector<1x4x1xf32>,
      %cst_28 = arith.constant 0.000000e+00 : f32
      %40 = vector.broadcast %cst_28 : f32 to vector<1x4x1xf32>
      %c0_29 = arith.constant 0 : index
      %c0_30 = arith.constant 0 : index
      %c0_31 = arith.constant 0 : index
      %41 = vector.load %arg6[%c0_29, %c0_30, %c0_31] : memref<1x4x1xf32, #tpu.memory_space<vmem>>, vector<1x4x1xf32>
      tpu.vector_store %arg6[%c0_29, %c0_30, %c0_31], %40 {strides = array<i32>} : memref<1x4x1xf32, #tpu.memory_space<vmem>>, vector<1x4x1xf32>,
    } else {
    }
    %c0 = arith.constant 0 : index
    %c0_1 = arith.constant 0 : index
    %c0_2 = arith.constant 0 : index
    %3 = vector.load %arg3[%c0, %c0_1, %c0_2] : memref<1x4x256xf32, #tpu.memory_space<vmem>>, vector<1x4x256xf32>
    %c0_3 = arith.constant 0 : index
    %c0_4 = arith.constant 0 : index
    %c0_5 = arith.constant 0 : index
    %4 = vector.load %arg4[%c0_3, %c0_4, %c0_5] : memref<1x1x256xi32, #tpu.memory_space<vmem>>, vector<1x1x256xi32>
    %5 = tpu.iota {dimensions = array<i32: 1>} : vector<1x4x256xi32>
    %6 = vector.broadcast %4 : vector<1x1x256xi32> to vector<1x4x256xi32>
    %7 = arith.cmpi eq, %6, %5 : vector<1x4x256xi32>
    %cst = arith.constant dense<0xFF800000> : vector<1x256xf32>
    %8 = vector.multi_reduction <maximumf>, %3, %cst [1] : vector<1x4x256xf32> to vector<1x256xf32>
    %9 = vector.shape_cast %8 : vector<1x256xf32> to vector<1x1x256xf32>
    %10 = vector.broadcast %9 : vector<1x1x256xf32> to vector<1x4x256xf32>
    %11 = arith.subf %3, %10 : vector<1x4x256xf32>
    %12 = math.exp %11 : vector<1x4x256xf32>
    %cst_6 = arith.constant dense<0.000000e+00> : vector<1x256xf32>
    %13 = vector.multi_reduction <add>, %12, %cst_6 [1] : vector<1x4x256xf32> to vector<1x256xf32>
    %14 = vector.shape_cast %13 : vector<1x256xf32> to vector<1x1x256xf32>
    %15 = math.log %14 : vector<1x1x256xf32>
    %16 = arith.addf %9, %15 : vector<1x1x256xf32>
    %cst_7 = arith.constant 0.000000e+00 : f32
    %17 = vector.broadcast %cst_7 : f32 to vector<1x4x256xf32>
    %18 = arith.select %7, %3, %17 : vector<1x4x256xi1>, vector<1x4x256xf32>
    %cst_8 = arith.constant dense<0.000000e+00> : vector<1x256xf32>
    %19 = vector.multi_reduction <add>, %18, %cst_8 [1] : vector<1x4x256xf32> to vector<1x256xf32>
    %20 = vector.shape_cast %19 : vector<1x256xf32> to vector<1x1x256xf32>
    %21 = arith.subf %16, %20 : vector<1x1x256xf32>
    %c0_9 = arith.constant 0 : index
    %c0_10 = arith.constant 0 : index
    %c0_11 = arith.constant 0 : index
    %22 = vector.load %arg5[%c0_9, %c0_10, %c0_11] : memref<1x4x1xf32, #tpu.memory_space<vmem>>, vector<1x4x1xf32>
    %23 = arith.extui %7 : vector<1x4x256xi1> to vector<1x4x256xi32>
    %24 = arith.sitofp %23 : vector<1x4x256xi32> to vector<1x4x256xf32>
    %cst_12 = arith.constant dense<0.000000e+00> : vector<1x4xf32>
    %25 = vector.multi_reduction <add>, %24, %cst_12 [2] : vector<1x4x256xf32> to vector<1x4xf32>
    %26 = vector.shape_cast %25 : vector<1x4xf32> to vector<1x4x1xf32>
    %27 = arith.addf %22, %26 : vector<1x4x1xf32>
    %c0_13 = arith.constant 0 : index
    %c0_14 = arith.constant 0 : index
    %c0_15 = arith.constant 0 : index
    %28 = vector.load %arg5[%c0_13, %c0_14, %c0_15] : memref<1x4x1xf32, #tpu.memory_space<vmem>>, vector<1x4x1xf32>
    tpu.vector_store %arg5[%c0_13, %c0_14, %c0_15], %27 {strides = array<i32>} : memref<1x4x1xf32, #tpu.memory_space<vmem>>, vector<1x4x1xf32>,
    %c0_16 = arith.constant 0 : index
    %c0_17 = arith.constant 0 : index
    %c0_18 = arith.constant 0 : index
    %29 = vector.load %arg6[%c0_16, %c0_17, %c0_18] : memref<1x4x1xf32, #tpu.memory_space<vmem>>, vector<1x4x1xf32>
    %cst_19 = arith.constant 0.000000e+00 : f32
    %30 = vector.shape_cast %21 : vector<1x1x256xf32> to vector<1x1x256xf32>
    %31 = vector.broadcast %30 : vector<1x1x256xf32> to vector<1x4x256xf32>
    %32 = vector.broadcast %cst_19 : f32 to vector<1x4x256xf32>
    %33 = arith.select %7, %31, %32 : vector<1x4x256xi1>, vector<1x4x256xf32>
    %cst_20 = arith.constant dense<0.000000e+00> : vector<1x4xf32>
    %34 = vector.multi_reduction <add>, %33, %cst_20 [2] : vector<1x4x256xf32> to vector<1x4xf32>
    %35 = vector.shape_cast %34 : vector<1x4xf32> to vector<1x4x1xf32>
    %36 = arith.addf %29, %35 : vector<1x4x1xf32>
    %c0_21 = arith.constant 0 : index
    %c0_22 = arith.constant 0 : index
    %c0_23 = arith.constant 0 : index
    %37 = vector.load %arg6[%c0_21, %c0_22, %c0_23] : memref<1x4x1xf32, #tpu.memory_space<vmem>>, vector<1x4x1xf32>
    tpu.vector_store %arg6[%c0_21, %c0_22, %c0_23], %36 {strides = array<i32>} : memref<1x4x1xf32, #tpu.memory_space<vmem>>, vector<1x4x1xf32>,
    return
  }
  func.func @transform_0(%arg0: i32, %arg1: i32, %arg2: i32) -> (i32, i32, i32) {
    %c1_i32 = arith.constant 1 : i32
    %0 = arith.muli %arg1, %c1_i32 : i32
    %1 = arith.addi %0, %arg2 : i32
    %c0_i32 = arith.constant 0 : i32
    %c0_i32_0 = arith.constant 0 : i32
    return %arg0, %c0_i32, %1 : i32, i32, i32
  }
  func.func @transform_1(%arg0: i32, %arg1: i32, %arg2: i32) -> (i32, i32, i32) {
    %c1_i32 = arith.constant 1 : i32
    %0 = arith.muli %arg1, %c1_i32 : i32
    %1 = arith.addi %0, %arg2 : i32
    %c0_i32 = arith.constant 0 : i32
    %c0_i32_0 = arith.constant 0 : i32
    return %arg0, %c0_i32, %1 : i32, i32, i32
  }
  func.func @transform_2(%arg0: i32, %arg1: i32, %arg2: i32) -> (i32, i32, i32) {
    %c1_i32 = arith.constant 1 : i32
    %0 = arith.muli %arg0, %c1_i32 : i32
    %1 = arith.addi %0, %arg1 : i32
    %c0_i32 = arith.constant 0 : i32
    %c0_i32_0 = arith.constant 0 : i32
    %c0_i32_1 = arith.constant 0 : i32
    return %1, %c0_i32, %c0_i32_0 : i32, i32, i32
  }
  func.func @transform_3(%arg0: i32, %arg1: i32, %arg2: i32) -> (i32, i32, i32) {
    %c1_i32 = arith.constant 1 : i32
    %0 = arith.muli %arg0, %c1_i32 : i32
    %1 = arith.addi %0, %arg1 : i32
    %c0_i32 = arith.constant 0 : i32
    %c0_i32_0 = arith.constant 0 : i32
    %c0_i32_1 = arith.constant 0 : i32
    return %1, %c0_i32, %c0_i32_0 : i32, i32, i32
  }
}

</mosaic_0001>

<bundles_post_ra>
// kernel: tpu_custom_call.1
= control target key start
LH: loop header
LB: loop body
LE: loop exit
PB: predicated region body
PF: predicated region fallthrough
CT: control target
= control target key end

     0   :  { %9 = vsyncpa [#allocation3], 0  ;;  %s953_s0 = inlined_call_operand.hbm [shape: f32[2,4,256], index: 0, kind: input, shape index: {}]   ;;  %s954_s1 = inlined_call_operand.hbm [shape: s32[2,1,256], index: 1, kind: input, shape index: {}]   ;;  %s955_s2 = inlined_call_operand.vmem [shape: f32[2,4,1], index: 2, kind: output, shape index: {0}]   ;;  %s956_s3 = inlined_call_operand.vmem [shape: f32[2,4,1], index: 3, kind: output, shape index: {1}]  }
   0x1   :  { %11 = vsyncpa [#allocation3 + $0x1], 0 }
   0x2   :  { %12 = vsyncpa [#allocation5], 0 }
   0x3   :  { %14 = vsyncpa [#allocation5 + $0x1], 0  ;;  %s761_s12 = smov 0   ;;  %s763_s13 = smov 0  }
   0x4   :  { %s765_s14 = smov 0   ;;  %s767_s15 = smov 0  }
   0x5   :  { %s769_s16 = smov 0   ;;  %s771_s17 = smov 0  }
   0x6 LB: > { %s537_s18 = sadd.s32 4294967295, %s736_s17   ;;  %s39_s19 = sadd.s32 1, %s732_s16  ;;  %s736_s17 = sphi %s771_s17, %s20_s17   ;;  %s732_s16 = sphi %s769_s16, %s965_s16   ;;  %s728_s15 = sphi %s767_s15, %s964_s15   ;;  %s724_s14 = sphi %s765_s14, %s963_s14   ;;  %s720_s13 = sphi %s763_s13, %s962_s13   ;;  %s716_s12 = sphi %s761_s12, %s961_s12  }
   0x7   : > { %p41_p0 = scmp.ge.s32.totalorder %s39_s19, 2  ;;  %s50_s20 = sadd.s32 1, %s724_s14 }
   0x8   : > { %p57_p1 = scmp.ne.s32.totalorder %s724_s14, %s720_s13  ;;  %p58_p2 = scmp.eq.s32.totalorder %s736_s17, 0 }
   0x9   : > { %s967_s19 = smov (%p41_p0, %s39_s19), 0  ;;  %p63_p4 = scmp.ne.s32.totalorder %s720_s13, %s716_s12 }
   0xa   : > { %p797_p3 = por %p58_p2, %p57_p1  ;;  %s45_s22 = ssub.s32 %s732_s16, %s967_s19 }
   0xb   : > { %p64_p5 = scmp.eq.s32.totalorder %s537_s18, 0  ;;  %p48_p6 = scmp.eq.s32.totalorder %s45_s22, 0 }
   0xc   : > { %p569_p8 = scmp.lt.s32.totalorder %s736_s17, 2  ;;  %s813_s25 = sand.u32 1, %s724_s14  }
   0xd   : > { %p804_p7 = por %p64_p5, %p63_p4  ;;  %s556_s26 = sshll.u32 %s732_s16, 7 }
   0xe   : > { %s810_s24 = scalar_select %p48_p6, %s724_s14, %s50_s20  }
   0xf   : > { %s541_s27 = sshll.u32 %s813_s25, 3  ;;  %s186_s30 = scalar_lea.hbm %s953_s0, %s556_s26 }
  0x10   : > { %s177_s4 = scalar_lea.vmem [#allocation2], %s541_s27  ;;  %p822_p9 = pnand %p569_p8, %p797_p3 }
  0x11   : > { %s188_s5 = sshll.u32 %s177_s4, 4  ;;  %p547_p10 = scmp.ge.s32.totalorder %s736_s17, 1  ;;  %s189_s5 = int_to_ptr.vmem [resolvable:$true] %s188_s5 }
  0x12   : > { %p215_p11 = scmp.lt.s32.totalorder %s736_s17, 3  ;;  %s174_s7 = scalar_lea.sflag [#allocation3], %s813_s25 }
  0x13   : > { %p628_p12 = pneg %p822_p9  ;;  %s639_s8 = scalar_lea.vmem %s189_s5, 128 }
  0x14   : > { %p640_p13 = scmp.ne.s32.totalorder %s189_s5, %s639_s8  ;;  %s738_s9 = smov [#allocation2]  }
  0x15   : > { %s644_s10 = sshll.u32 %s738_s9, 4  ;;  %s645_s10 = int_to_ptr.vmem [resolvable:$false] %s644_s10 }
  0x16   : > { %p642_p0 = pnand %p640_p13, %p628_p12  ;;  %s646_s11 = scalar_lea.vmem %s645_s10, 256 }
  0x17   : > { %p647_p2 = scmp.lt.s32.totalorder %s189_s5, %s645_s10  ;;  %p648_p3 = scmp.lt.s32.totalorder %s646_s11, %s639_s8 }
  0x18   : > { %p643_p1 = pneg %p642_p0 }
  0x19   : > { %p649_p4 = por %p648_p3, %p647_p2 }
  0x1b   : > { %p650_p5 = pnand %p649_p4, %p643_p1 }
  0x1d   : > { %653 = shalt.err (!%p650_p5)
}
  0x1e   : > { %565 = dma.hbm_to_vmem [thread:$0]  (!%p822_p9), %s186_s30, 128, %s189_s5, %s174_s7  }
  0x1f   : > { %p840_p6 = pnand %p547_p10, %p215_p11  ;;  %s544_s18 = sshll.u32 %s813_s25, 1 }
  0x20   : > { %s557_s20 = sshll.u32 %s732_s16, 5  ;;  %s199_s27 = scalar_lea.vmem [#allocation4], %s544_s18 }
  0x21   : > { %s208_s26 = scalar_lea.hbm %s954_s1, %s557_s20  ;;  %s210_s28 = sshll.u32 %s199_s27, 4  ;;  %s211_s28 = int_to_ptr.vmem [resolvable:$true] %s210_s28 }
  0x22   : > { %s196_s29 = scalar_lea.sflag [#allocation5], %s813_s25  ;;  %s667_s4 = scalar_lea.vmem %s211_s28, 32 }
  0x23   : > { %p668_p8 = scmp.ne.s32.totalorder %s211_s28, %s667_s4  ;;  %s739_s30 = smov [#allocation4]  }
  0x24   : > { %s672_s5 = sshll.u32 %s739_s30, 4  ;;  %s673_s5 = int_to_ptr.vmem [resolvable:$false] %s672_s5 }
  0x25   : > { %p670_p13 = pnand %p668_p8, %p628_p12  ;;  %s674_s7 = scalar_lea.vmem %s673_s5, 64 }
  0x26   : > { %p675_p10 = scmp.lt.s32.totalorder %s211_s28, %s673_s5  ;;  %p676_p11 = scmp.lt.s32.totalorder %s674_s7, %s667_s4 }
  0x27   : > { %p671_p0 = pneg %p670_p13 }
  0x28   : > { %p677_p1 = por %p676_p11, %p675_p10 }
  0x2a   : > { %p678_p2 = pnand %p677_p1, %p671_p0 }
  0x2c   : > { %681 = shalt.err (!%p678_p2)
}
  0x2d   : > { %568 = dma.hbm_to_vmem [thread:$0]  (!%p822_p9), %s208_s26, 32, %s211_s28, %s196_s29  }
  0x2e   : > { %219 = sbr.rel (%p840_p6) target bundleno = 271 (0x10f), region = 28  ;;  %s221_s25 = sand.u32 (!%p840_p6), 1, %s720_s13  }
  0x2f   : > { %s548_s8 = sshll.u32 (!%p840_p6), %s221_s25, 3  ;;  %s222_s9 = scalar_lea.sflag (!%p840_p6), [#allocation3], %s221_s25 }
  0x30   : > { %s225_s10 = scalar_lea.vmem (!%p840_p6), [#allocation2], %s548_s8 }
  0x33   : > { %707 = dma.done.wait (%p804_p7), %s222_s9, 128  }
  0x34   : > { %709 = vsyncadd (%p804_p7), %s222_s9, 4294967168  ;;  %s549_s11 = sshll.u32 %s221_s25, 1  ;;  %s231_s18 = scalar_lea.sflag [#allocation5], %s221_s25 }
  0x35   : > { %s234_s20 = scalar_lea.vmem [#allocation4], %s549_s11 }
  0x36   : > { %711 = dma.done.wait (%p804_p7), %s231_s18, 32  }
  0x37   : > { %713 = vsyncadd (%p804_p7), %s231_s18, 4294967264  ;;  %v292_v0 = vlaneseq  ;;  %p272_p9 = scmp.lt.s32.totalorder %s728_s15, 1  ;;  %vm287_vm0 = vcmask 3072   ;;  %vm307_vm1 = vcmask 1043456   ;;  %v740_v4 = vmov 0.0   ;;  %v290_v6 = vld [vmem:[%s225_s10] sm:$0xff] }
  0x38   : > { %v291_v5 = vld [vmem:[%s234_s20] sm:$0x3]  ;;  %v305_v9 = vcombine.high %v290_v6, %v290_v6  ;;  %v308_v10 = vsel %vm307_vm1, %v290_v6, -inf }
  0x39   : > { %v867_v1 = vshrl.u32 %v292_v0, 7  ;;  %s969_s15 = smov (!%p272_p9, %s728_s15), 1  ;;  %v309_v12 = vrot.slane %v308_v10, 4 }
  0x3a   : > { %s550_s6 = sshll.u32 %s969_s15, 2  ;;  %v315_v11 = vsel %vm307_vm1, %v305_v9, -inf }
  0x3b   : > { %v296_v2 = vsub.s32 0, %v867_v1  ;;  %v300_v3 = vsub.s32 1, %v867_v1  ;;  %s880_s21 = scalar_lea.vmem %s955_s2, %s550_s6  ;;  %v316_v15 = vrot.slane %v315_v11, 4  ;;  %v310_v20 = vmax.f32 %v308_v10, %v309_v12  ;;  %s907_s27 = scalar_lea.vmem %s956_s3, %s550_s6 }
  0x3c   : > { %288 = vst.msk [vmem:[%s880_s21] sm:$0xf] %vm287_vm0, %v740_v4  ;;  %289 = vst.msk [vmem:[%s907_s27] sm:$0xf] %vm287_vm0, %v740_v4 }
  0x3d   : > { %v884_v7 = vrot.slane %v291_v5, %v296_v2  ;;  %v886_v8 = vrot.slane %v291_v5, %v300_v3  ;;  %v317_v19 = vmax.f32 %v315_v11, %v316_v15  ;;  %v311_v22 = vrot.slane %v310_v20, 2 }
  0x3f   : > { %vm302_vm2 = vcmp.eq.s32.totalorder %v884_v7, %v867_v1  ;;  %vm303_vm3 = vcmp.eq.s32.totalorder %v886_v8, %v867_v1  ;;  %v318_v21 = vrot.slane %v317_v19, 2  ;;  %v312_v24 = vmax.f32 %v310_v20, %v311_v22 }
  0x40   : > { %v552_v13 = vsel %vm302_vm2, 1.0, %v740_v4  ;;  %v553_v14 = vsel %vm303_vm3, 1.0, %v740_v4  ;;  %v352_v35 = vsel %vm302_vm2, %v290_v6, 0.0  ;;  %v353_v38 = vsel %vm303_vm3, %v305_v9, 0.0 }
  0x41   : > { %v375_v16 = vsel %vm307_vm1, %v552_v13, 0.0  ;;  %v376_v17 = vsel %vm307_vm1, %v553_v14, 0.0  ;;  %v319_v23 = vmax.f32 %v317_v19, %v318_v21  ;;  %v313_v26 = vrot.slane %v312_v24, 1 }
  0x42   : > { %v377_v18 = vadd.f32 %v376_v17, %v375_v16  ;;  %v354_v41 = vsel %vm307_vm1, %v352_v35, 0.0  ;;  %v361_v44 = vsel %vm307_vm1, %v353_v38, 0.0 }
  0x43   : > { %v320_v25 = vrot.slane %v319_v23, 1  ;;  %v314_v28 = vmax.f32 %v312_v24, %v313_v26  ;;  %v355_v45 = vrot.slane %v354_v41, 4  ;;  %v362_v48 = vrot.slane %v361_v44, 4  ;;  %v370_v16 = vld [vmem:[%s880_s21] sm:$0xf] }
  0x44   : > { %378 = vadd.xlane.f32.xlu0 %v377_v18  ;;  %v383_v19 = vld [vmem:[%s907_s27] sm:$0xf] }
  0x45   : > { %v321_v27 = vmax.f32 %v319_v23, %v320_v25  ;;  %v356_v51 = vadd.f32 %v355_v45, %v354_v41  ;;  %v363_v54 = vadd.f32 %v362_v48, %v361_v44 }
  0x47   : > { %v324_v29 = vcombine.low %v314_v28, %v321_v27  ;;  %v357_v56 = vrot.slane %v356_v51, 2  ;;  %v364_v57 = vrot.slane %v363_v54, 2 }
  0x49   : > { %v326_v30 = vsub.f32 %v290_v6, %v324_v29  ;;  %v358_v58 = vadd.f32 %v357_v56, %v356_v51  ;;  %v365_v59 = vadd.f32 %v364_v57, %v363_v54 }
  0x4b   : > { %v327_v31 = vmul.f32 1.442695, %v326_v30  ;;  %v359_v60 = vrot.slane %v358_v58, 1  ;;  %v366_v61 = vrot.slane %v365_v59, 1 }
  0x4d   : > { %620 = vpow2.f32 %v327_v31  ;;  %v360_v0 = vadd.f32 %v359_v60, %v358_v58  ;;  %v367_v5 = vadd.f32 %v366_v61, %v365_v59 }
  0x5a   : > { %v621_v32 = vpop.eup %620 }
  0x5b   : > { %v330_v33 = vcombine.high %v621_v32, %v621_v32  ;;  %v332_v34 = vsel %vm307_vm1, %v621_v32, 0.0 }
  0x5c   : > { %v333_v36 = vrot.slane %v332_v34, 4 }
  0x5d   : > { %v339_v37 = vsel %vm307_vm1, %v330_v33, 0.0 }
  0x5e   : > { %v334_v39 = vadd.f32 %v333_v36, %v332_v34  ;;  %v340_v40 = vrot.slane %v339_v37, 4 }
  0x60   : > { %v335_v42 = vrot.slane %v334_v39, 2  ;;  %v341_v43 = vadd.f32 %v340_v40, %v339_v37 }
  0x62   : > { %v336_v46 = vadd.f32 %v335_v42, %v334_v39  ;;  %v342_v47 = vrot.slane %v341_v43, 2 }
  0x64   : > { %v337_v49 = vrot.slane %v336_v46, 1  ;;  %v343_v50 = vadd.f32 %v342_v47, %v341_v43 }
  0x66   : > { %v338_v52 = vadd.f32 %v337_v49, %v336_v46  ;;  %v344_v53 = vrot.slane %v343_v50, 1 }
  0x68   : > { %v345_v55 = vadd.f32 %v344_v53, %v343_v50  ;;  %622 = vlog2.f32 %v338_v52 }
  0x6a   : > { %624 = vlog2.f32 %v345_v55 }
  0x75   : > { %v623_v62 = vpop.eup %622 }
  0x76   : > { %v347_v63 = vmul.f32 0.6931472, %v623_v62 }
  0x77   : > { %v625_v2 = vpop.eup %624 }
  0x78   : > { %v349_v3 = vmul.f32 0.6931472, %v625_v2  ;;  %v350_v4 = vadd.f32 %v347_v63, %v314_v28 }
  0x7a   : > { %v351_v6 = vadd.f32 %v349_v3, %v321_v27  ;;  %v368_v9 = vsub.f32 %v350_v4, %v360_v0 }
  0x7c   : > { %v369_v10 = vsub.f32 %v351_v6, %v367_v5  ;;  %v384_v11 = vsel %vm302_vm2, %v368_v9, 0.0 }
  0x7d   : > { %v386_v12 = vsel %vm307_vm1, %v384_v11, 0.0 }
  0x7e   : > { %v385_v13 = vsel %vm303_vm3, %v369_v10, 0.0 }
  0x7f   : > { %v387_v14 = vsel %vm307_vm1, %v385_v13, 0.0 }
  0x80   : > { %v388_v15 = vadd.f32 %v387_v14, %v386_v12 }
  0x82   : > { %389 = vadd.xlane.f32.xlu0 %v388_v15 }
  0xcd   : > { %v379_v17 = vpop.xlane.xlu0 %378 }
  0xce   : > { %v380_v18 = vadd.f32 %v379_v17, %v370_v16 }
  0xd0   : > { %382 = vst.msk [vmem:[%s880_s21] sm:$0xf] %vm287_vm0, %v380_v18 }
 0x10b   : > { %v390_v20 = vpop.xlane.xlu0 %389 }
 0x10c   : > { %v391_v21 = vadd.f32 %v390_v20, %v383_v19 }
 0x10e   : > { %392 = vst.msk [vmem:[%s907_s27] sm:$0xf] %vm287_vm0, %v391_v21 }
 0x10f PF: > { %s20_s17 = sadd.s32 1, %s736_s17   ;;  %s961_s12 = smov %s720_s13 }
 0x110   : > { %p17_p7 = scmp.ge.s32.totalorder %s20_s17, 4   ;;  %s962_s13 = smov %s724_s14 }
 0x111   : > { %s963_s14 = smov %s810_s24  ;;  %s964_s15 = smov %s732_s16 }
 0x112   : > { %s965_s16 = smov %s967_s19  ;;  %19 = sbr.rel (!%p17_p7) target bundleno = 6 (0x6), region = 97 }
 0x117   :  { %432 = vsyncpa [#allocation3], 1 }
 0x118   :  { %434 = vsyncpa [#allocation3 + $0x1], 1 }
 0x119   :  { %435 = vsyncpa [#allocation5], 1 }
 0x11a   :  { %437 = vsyncpa [#allocation5 + $0x1], 1 }

</bundles_post_ra>
